<compile_context>
chip_gen: v6e
topology: v6e:2x2x1
jax: 0.10.0
libtpu: 0.0.40
codegen_flags: <defaults>
</compile_context>

<pallas_src>
import functools

import jax
import jax.numpy as jnp
from jax.experimental import pallas as pl
from jax.experimental.pallas import tpu as pltpu


def _round_up(x, m):
    return (x + m - 1) // m * m


@functools.lru_cache(maxsize=1)
def _vmem_cap_bytes():
    # ~60% of physical VMEM; conservative fallback = v7x per-TC 64 MiB.
    try:
        phys = int(pltpu.get_tpu_info().vmem_capacity_bytes)
    except Exception:
        phys = 64 << 20
    return int(phys * 0.6)


def _rgcn_kernel(h_pre_ref, w_ref, h_prop_ref, bias_ref, o_ref):
    # Self-loop message on the MXU, f32 accumulation.
    loop_msg = jnp.dot(h_pre_ref[...], w_ref[...],
                       preferred_element_type=jnp.float32)
    out = h_prop_ref[...].astype(jnp.float32) + bias_ref[...] + loop_msg
    o_ref[...] = jnp.maximum(out, 0.0).astype(o_ref.dtype)


@functools.partial(jax.jit, static_argnames=("tile_n",))
def _rgcn_forward_impl(h_pre, loop_weight, h_prop, bias, *, tile_n):
    N, in_feat = h_pre.shape
    out_feat = loop_weight.shape[1]
    out_dtype = h_prop.dtype

    in_sz = jnp.dtype(h_pre.dtype).itemsize
    w_sz = jnp.dtype(loop_weight.dtype).itemsize
    prop_sz = jnp.dtype(h_prop.dtype).itemsize
    out_sz = jnp.dtype(out_dtype).itemsize

    vmem_cap = _vmem_cap_bytes()

    def footprint(t):
        # Double-buffered streaming tiles + the resident weight/bias blocks.
        return (2 * t * in_feat * in_sz            # h_pre tiles
                + 2 * t * out_feat * prop_sz       # h_prop tiles
                + 2 * t * out_feat * out_sz        # out tiles
                + 2 * in_feat * out_feat * w_sz    # weight (resident)
                + 2 * out_feat * 4)                # bias (resident)

    # Node tile: multiple of 8 sublanes, no larger than the node count (rounded
    # up), shrunk until the VMEM footprint fits the generation-aware cap.
    tile_n_eff = max(8, min(_round_up(tile_n, 8), _round_up(N, 8)))
    while tile_n_eff > 8 and footprint(tile_n_eff) > vmem_cap:
        tile_n_eff = max(8, _round_up(tile_n_eff // 2, 8))
    # TODO(synk): if in_feat*out_feat alone exceeds the VMEM cap, a K (in_feat)
    # reduction grid axis with an f32 VMEM accumulator would be required.

    # Guarantee >= 2 node tiles when possible so both v7x TensorCores get work.
    if N > 8 and pl.cdiv(N, tile_n_eff) < 2:
        tile_n_eff = min(tile_n_eff, _round_up(pl.cdiv(N, 2), 8))

    grid = (pl.cdiv(N, tile_n_eff),)

    vmem_limit = int(min(max(footprint(tile_n_eff) + (2 << 20), 16 << 20),
                         vmem_cap))

    cost = pl.CostEstimate(
        flops=2 * N * in_feat * out_feat,
        transcendentals=0,
        bytes_accessed=int(N * in_feat * in_sz
                           + in_feat * out_feat * w_sz
                           + N * out_feat * prop_sz
                           + out_feat * 4
                           + N * out_feat * out_sz),
    )

    bias2d = bias.astype(jnp.float32).reshape(1, out_feat)

    out = pl.pallas_call(
        _rgcn_kernel,
        out_shape=jax.ShapeDtypeStruct((N, out_feat), out_dtype),
        grid_spec=pltpu.PrefetchScalarGridSpec(
            num_scalar_prefetch=0,
            grid=grid,
            in_specs=[
                # streamed per node tile
                pl.BlockSpec((tile_n_eff, in_feat), lambda i: (i, 0)),   # h_pre
                # resident across the whole grid (constant block index)
                pl.BlockSpec((in_feat, out_feat), lambda i: (0, 0)),     # weight
                pl.BlockSpec((tile_n_eff, out_feat), lambda i: (i, 0)),  # h_prop
                pl.BlockSpec((1, out_feat), lambda i: (0, 0)),           # bias
            ],
            out_specs=pl.BlockSpec((tile_n_eff, out_feat), lambda i: (i, 0)),
        ),
        compiler_params=pltpu.CompilerParams(
            dimension_semantics=("parallel",),
            vmem_limit_bytes=vmem_limit,
        ),
        cost_estimate=cost,
    )(h_pre, loop_weight, h_prop, bias2d)

    return out


def rgcn_layer_forward(h_pre, loop_weight, h_prop, bias, *, tile_n=1024):
    """h_pre:       [N, in_feat]  node features before propagate (self-loop input)
       loop_weight: [in_feat, out_feat]
       h_prop:      [N, out_feat] node features produced by propagate()
       bias:        [out_feat]
       returns:     [N, out_feat] = relu(h_prop + bias + h_pre @ loop_weight)
       Pass bf16 h_pre / loop_weight / h_prop to halve HBM traffic (f32 accum
       in-kernel); the output dtype follows h_prop.
    """
    return _rgcn_forward_impl(h_pre, loop_weight, h_prop, bias, tile_n=tile_n)


def _xavier_uniform(key, shape, gain):
    fan_in, fan_out = shape
    bound = gain * jnp.sqrt(6.0 / (fan_in + fan_out))
    return jax.random.uniform(key, shape, jnp.float32, -bound, bound)


if __name__ == "__main__":
    # Small synthetic shapes; deliberately non-aligned (N not multiple of the
    # tile, out_feat not a multiple of 128) to exercise the ragged-tail path.
    N, in_feat, out_feat = 200, 48, 40

    key = jax.random.PRNGKey(0)
    k_h, k_prop, k_w, k_b = jax.random.split(key, 4)

    relu_gain = jnp.sqrt(2.0)  # nn.init.calculate_gain('relu')

    loop_weight = _xavier_uniform(k_w, (in_feat, out_feat), relu_gain)
    b_bound = relu_gain * jnp.sqrt(6.0 / (1 + out_feat))
    bias = jax.random.uniform(k_b, (out_feat,), jnp.float32, -b_bound, b_bound)

    # g.ndata['h'] before the layer (input to the self-loop matmul).
    h_pre = jax.random.normal(k_h, (N, in_feat), jnp.float32)
    # TODO(synk): propagate() is abstract (NotImplementedError) in the base
    # class; its result (message-passed node features) is supplied here as an
    # external input `h_prop` rather than computed in-kernel.
    h_prop = jax.random.normal(k_prop, (N, out_feat), jnp.float32)
    # dropout=0.0 in this instantiation -> self.dropout is None -> no-op.

    # Pure-JAX reference.
    ref = jnp.maximum(h_prop + bias[None, :] + h_pre @ loop_weight, 0.0)

    # f32 path.
    out = jax.block_until_ready(
        rgcn_layer_forward(h_pre, loop_weight, h_prop, bias))
    assert out.shape == (N, out_feat)
    assert out.dtype == h_prop.dtype
    assert jnp.allclose(out, ref, atol=1e-4, rtol=1e-4)

    # bf16 streaming path: cast inputs once outside the kernel (no pad, no
    # extra f32 intermediate); output is bf16, accumulation stays f32.
    out_bf16 = jax.block_until_ready(
        rgcn_layer_forward(h_pre.astype(jnp.bfloat16),
                           loop_weight.astype(jnp.bfloat16),
                           h_prop.astype(jnp.bfloat16),
                           bias))
    assert out_bf16.dtype == jnp.bfloat16
    assert jnp.allclose(out_bf16.astype(jnp.float32), ref,
                        atol=1.5e-1, rtol=1e-1)

    print("KERNEL_OK")
</pallas_src>

<mosaic_0001>
module attributes {stable_mosaic.version = 11 : i64} {
  func.func @_rgcn_kernel(%arg0: i32, %arg1: memref<104x48xf32, #tpu.memory_space<vmem>>, %arg2: memref<48x40xf32, #tpu.memory_space<vmem>>, %arg3: memref<104x40xf32, #tpu.memory_space<vmem>>, %arg4: memref<1x40xf32, #tpu.memory_space<vmem>>, %arg5: memref<104x40xf32, #tpu.memory_space<vmem>>) attributes {dimension_semantics = [#tpu.dimension_semantics<parallel>], iteration_bounds = array<i64: 2>, scalar_prefetch = 0 : i64, scratch_operands = 0 : i64, tpu.core_type = #tpu.core_type<tc>, window_params = [{transform_indices = @transform_0, window_bounds = array<i64: 104, 48>}, {pipeline_mode = #tpu.pipeline_mode<synchronous>, transform_indices = @transform_1, window_bounds = array<i64: 48, 40>}, {transform_indices = @transform_2, window_bounds = array<i64: 104, 40>}, {pipeline_mode = #tpu.pipeline_mode<synchronous>, transform_indices = @transform_3, window_bounds = array<i64: 1, 40>}, {transform_indices = @transform_4, window_bounds = array<i64: 104, 40>}]} {
    %c0 = arith.constant 0 : index
    %c0_0 = arith.constant 0 : index
    %0 = vector.load %arg1[%c0, %c0_0] : memref<104x48xf32, #tpu.memory_space<vmem>>, vector<104x48xf32>
    %c0_1 = arith.constant 0 : index
    %c0_2 = arith.constant 0 : index
    %1 = vector.load %arg2[%c0_1, %c0_2] : memref<48x40xf32, #tpu.memory_space<vmem>>, vector<48x40xf32>
    %cst = arith.constant dense<0.000000e+00> : vector<104x40xf32>
    %2 = tpu.matmul %0, %1, %cst {dimension_numbers = #tpu.dot_dimension_numbers<[1], [0], [0], [1], [0, 0, 1, 1], [], []>} : vector<104x48xf32>, vector<48x40xf32>, vector<104x40xf32> -> vector<104x40xf32>
    %c0_3 = arith.constant 0 : index
    %c0_4 = arith.constant 0 : index
    %3 = vector.load %arg3[%c0_3, %c0_4] : memref<104x40xf32, #tpu.memory_space<vmem>>, vector<104x40xf32>
    %c0_5 = arith.constant 0 : index
    %c0_6 = arith.constant 0 : index
    %4 = vector.load %arg4[%c0_5, %c0_6] : memref<1x40xf32, #tpu.memory_space<vmem>>, vector<1x40xf32>
    %5 = vector.broadcast %4 : vector<1x40xf32> to vector<104x40xf32>
    %6 = arith.addf %3, %5 : vector<104x40xf32>
    %7 = arith.addf %6, %2 : vector<104x40xf32>
    %cst_7 = arith.constant 0.000000e+00 : f32
    %8 = vector.broadcast %cst_7 : f32 to vector<104x40xf32>
    %9 = arith.maximumf %7, %8 : vector<104x40xf32>
    %c0_8 = arith.constant 0 : index
    %c0_9 = arith.constant 0 : index
    %10 = vector.load %arg5[%c0_8, %c0_9] : memref<104x40xf32, #tpu.memory_space<vmem>>, vector<104x40xf32>
    tpu.vector_store %arg5[%c0_8, %c0_9], %9 {strides = array<i32>} : memref<104x40xf32, #tpu.memory_space<vmem>>, vector<104x40xf32>,
    return
  }
  func.func @transform_0(%arg0: i32) -> (i32, i32) {
    %c0_i32 = arith.constant 0 : i32
    %c0_i32_0 = arith.constant 0 : i32
    return %arg0, %c0_i32 : i32, i32
  }
  func.func @transform_1(%arg0: i32) -> (i32, i32) {
    %c0_i32 = arith.constant 0 : i32
    %c0_i32_0 = arith.constant 0 : i32
    %c0_i32_1 = arith.constant 0 : i32
    return %c0_i32, %c0_i32_0 : i32, i32
  }
  func.func @transform_2(%arg0: i32) -> (i32, i32) {
    %c0_i32 = arith.constant 0 : i32
    %c0_i32_0 = arith.constant 0 : i32
    return %arg0, %c0_i32 : i32, i32
  }
  func.func @transform_3(%arg0: i32) -> (i32, i32) {
    %c0_i32 = arith.constant 0 : i32
    %c0_i32_0 = arith.constant 0 : i32
    %c0_i32_1 = arith.constant 0 : i32
    return %c0_i32, %c0_i32_0 : i32, i32
  }
  func.func @transform_4(%arg0: i32) -> (i32, i32) {
    %c0_i32 = arith.constant 0 : i32
    %c0_i32_0 = arith.constant 0 : i32
    return %arg0, %c0_i32 : i32, i32
  }
}

</mosaic_0001>

<bundles_post_ra>
// kernel: _rgcn_forward_impl.1
= control target key start
LH: loop header
LB: loop body
LE: loop exit
PB: predicated region body
PF: predicated region fallthrough
CT: control target
= control target key end

     0   :  { %s1127_s15 = smov 0   ;;  %s1129_s16 = smov 0   ;;  %s1409_s0 = inlined_call_operand.vmem [shape: f32[200,48], index: 0, kind: input, shape index: {}]   ;;  %s1410_s1 = inlined_call_operand.vmem [shape: f32[48,40], index: 1, kind: input, shape index: {}]   ;;  %s1411_s2 = inlined_call_operand.vmem [shape: f32[200,40], index: 2, kind: input, shape index: {}]   ;;  %s1412_s3 = inlined_call_operand.vmem [shape: f32[1,40], index: 3, kind: input, shape index: {}]   ;;  %s1413_s4 = inlined_call_operand.vmem [shape: f32[200,40], index: 4, kind: output, shape index: {}]  }
   0x1   :  { %s1131_s17 = smov 0  }
   0x2 LB: > { %s1140_s18 = sadd.s32 4294967295, %s1066_s17   ;;  %s1142_s19 = sadd.s32 1, %s1066_s17   ;;  %s1066_s17 = sphi %s1131_s17, %s1420_s17   ;;  %s1062_s16 = sphi %s1129_s16, %s1419_s16   ;;  %s1058_s15 = sphi %s1127_s15, %s1418_s15  }
   0x3   : > { %s112_s20 = ssub.s32 %s1066_s17, %s1142_s19  ;;  %s115_s21 = sadd.s32 1, %s1062_s16 }
   0x4   : > { %p113_p0 = scmp.eq.s32.totalorder %s112_s20, 0  ;;  %p125_p1 = scmp.ne.s32.totalorder %s1062_s16, %s1058_s15 }
   0x5   : > { %p126_p2 = scmp.eq.s32.totalorder %s1140_s18, 1  ;;  %p804_p3 = scmp.ge.s32.totalorder %s1066_s17, 1 }
   0x6   : > { %s1150_s22 = scalar_select %p113_p0, %s1062_s16, %s115_s21  }
   0x7   : > { %p1152_p4 = por %p126_p2, %p125_p1  ;;  %p190_p5 = scmp.lt.s32.totalorder %s1066_s17, 3 }
   0x9   : > { %p191_p6 = pnand %p804_p3, %p190_p5 }
   0xa   : > { %s1160_s26 = smul.u32 (!%p191_p6), 13, %s1140_s18  ;;  %s225_s28 = sand.u32 (!%p191_p6), 1, %s1058_s15  }
   0xb   : > { %194 = sbr.rel (%p191_p6) target bundleno = 304 (0x130), region = 36 }
   0xc   : > { %p233_p7 = scmp.lt.s32.totalorder (!%p191_p6), %s1160_s26, 24  ;;  %s916_s29 = smul.u32 (!%p191_p6), 104, %s225_s28 }
   0xe   : > { %s1276_s15 = scalar_lea.vmem (!%p191_p6), [#allocation2], %s916_s29  }
  0x10   : > { %v279_v0 = vld [vmem:[%s1410_s1 + $0x28] sm:$0xff]  ;;  %v1100_v1 = vmov 0.0   ;;  %v278_v2 = vld [vmem:[%s1410_s1 + $0x20] sm:$0xff]  ;;  %v277_v3 = vld [vmem:[%s1410_s1 + $0x18] sm:$0xff]  ;;  %s1174_s5 = scalar_select %p233_p7, %s1160_s26, 24  ;;  %vm280_vm0 = vcmask 392192  }
  0x11   : > { %853 = vmatprep.subr.mxu0 %v1100_v1  ;;  %904 = vmatprep.subr.mxu1 %v1100_v1  ;;  %v276_v4 = vld [vmem:[%s1410_s1 + $0x10] sm:$0xff]  ;;  %v275_v5 = vld [vmem:[%s1410_s1 + $0x8] sm:$0xff]  ;;  %v274_v6 = vld [vmem:[%s1410_s1] sm:$0xff]  ;;  %vm1101_vm1 = vmmov 0   ;;  %vm509_vm2 = vcmask 326656   ;;  %s531_s30 = ssub.s32 (%p1152_p4), 25, %s1160_s26 }
  0x12   : > { %854 = vmatpush3.msra.mxu0 %v279_v0  ;;  %910 = vmatpush3.msra.mxu1 %v279_v0  ;;  %s805_s8 = sshll.u32 %s1174_s5, 3  ;;  %v1264_v21 = vld [vmem:[%s1412_s3] ss:$0 sm:$0xff]  ;;  %s833_s5 = smul.u32 (%p1152_p4), 104, %s1140_s18 }
  0x13   : > { %855 = vmatprep.subr.mxu0 %v1100_v1  ;;  %905 = vmatprep.subr.mxu1 %v1100_v1  ;;  %s1192_s13 = scalar_lea.vmem %s1409_s0, %s805_s8  ;;  %s1258_s24 = scalar_lea.vmem %s1411_s2, %s805_s8 }
  0x14   : > { %856 = vmatpush3.msra.mxu0 %v278_v2  ;;  %911 = vmatpush3.msra.mxu1 %v278_v2  ;;  %v261_v7 = vld [vmem:[%s1192_s13] sm:$0xff]  ;;  %v268_v8 = vld [vmem:[%s1192_s13 + $0x38] sm:$0xff]  ;;  %v262_v9 = vld [vmem:[%s1192_s13 + $0x8] sm:$0xff]  ;;  %p532_p8 = scmp.lt.s32.totalorder (%p1152_p4), %s531_s30, 13  ;;  %s1327_s8 = scalar_lea.vmem (%p1152_p4), %s1413_s4, %s833_s5  }
  0x15   : > { %857 = vmatprep.subr.mxu0 %v1100_v1  ;;  %906 = vmatprep.subr.mxu1 %v1100_v1  ;;  %v269_v10 = vld [vmem:[%s1192_s13 + $0x40] sm:$0xff]  ;;  %v263_v11 = vld [vmem:[%s1192_s13 + $0x10] sm:$0xff]  ;;  %v270_v12 = vld [vmem:[%s1192_s13 + $0x48] sm:$0xff] }
  0x16   : > { %858 = vmatpush3.msra.mxu0 %v277_v3  ;;  %912 = vmatpush3.msra.mxu1 %v277_v3  ;;  %v264_v13 = vld [vmem:[%s1192_s13 + $0x18] sm:$0xff]  ;;  %v271_v14 = vld [vmem:[%s1192_s13 + $0x50] sm:$0xff]  ;;  %v265_v15 = vld [vmem:[%s1192_s13 + $0x20] sm:$0xff] }
  0x17   : > { %859 = vmatprep.subr.mxu0 %v1100_v1  ;;  %907 = vmatprep.subr.mxu1 %v1100_v1  ;;  %v272_v16 = vld [vmem:[%s1192_s13 + $0x58] sm:$0xff]  ;;  %v266_v17 = vld [vmem:[%s1192_s13 + $0x28] sm:$0xff]  ;;  %v273_v18 = vld [vmem:[%s1192_s13 + $0x60] sm:$0xff] }
  0x18   : > { %860 = vmatpush3.msra.mxu0 %v276_v4  ;;  %913 = vmatpush3.msra.mxu1 %v276_v4  ;;  %v267_v19 = vld [vmem:[%s1192_s13 + $0x30] sm:$0xff]  ;;  %v450_v20 = vld [vmem:[%s1258_s24] sm:$0xff]  ;;  %v457_v22 = vld [vmem:[%s1258_s24 + $0x38] sm:$0xff] }
  0x19   : > { %861 = vmatprep.subr.mxu0 %v1100_v1  ;;  %908 = vmatprep.subr.mxu1 %v1100_v1  ;;  %v470_v23 = vadd.f32 %v1264_v21, %v450_v20  ;;  %v451_v24 = vld [vmem:[%s1258_s24 + $0x8] sm:$0xff]  ;;  %v477_v25 = vadd.f32 %v1264_v21, %v457_v22  ;;  %v458_v27 = vld [vmem:[%s1258_s24 + $0x40] sm:$0xff]  ;;  %v452_v32 = vld [vmem:[%s1258_s24 + $0x10] sm:$0xff] }
  0x1a   : > { %862 = vmatpush3.msra.mxu0 %v275_v5  ;;  %914 = vmatpush3.msra.mxu1 %v275_v5  ;;  %v471_v29 = vadd.f32 %v1264_v21, %v451_v24  ;;  %v478_v35 = vadd.f32 %v1264_v21, %v458_v27  ;;  %v459_v38 = vld [vmem:[%s1258_s24 + $0x48] sm:$0xff]  ;;  %v472_v41 = vadd.f32 %v1264_v21, %v452_v32  ;;  %v453_v44 = vld [vmem:[%s1258_s24 + $0x18] sm:$0xff]  ;;  %v460_v50 = vld [vmem:[%s1258_s24 + $0x50] sm:$0xff] }
  0x1b   : > { %863 = vmatprep.subr.mxu0 %v1100_v1  ;;  %865 = vmatprep.mubr.msk.f32.mxu0 %vm1101_vm1, %v1100_v1  ;;  %v479_v47 = vadd.f32 %v1264_v21, %v459_v38  ;;  %v473_v53 = vadd.f32 %v1264_v21, %v453_v44  ;;  %v454_v56 = vld [vmem:[%s1258_s24 + $0x20] sm:$0xff]  ;;  %v480_v59 = vadd.f32 %v1264_v21, %v460_v50  ;;  %v461_v62 = vld [vmem:[%s1258_s24 + $0x58] sm:$0xff]  ;;  %v455_v4 = vld [vmem:[%s1258_s24 + $0x28] sm:$0xff] }
  0x1c   : > { %864 = vmatpush3.msra.mxu0 %v274_v6  ;;  %909 = vmatprep.subr.mxu1 %v1100_v1 }
  0x1d   : > { %866 = vmatmul.mubr.msk.f32.vlgmr.msra.gmra.mxu0 %vm280_vm0, %v261_v7  ;;  %915 = vmatpush3.msra.mxu1 %v274_v6  ;;  %v481_v7 = vadd.f32 %v1264_v21, %v461_v62 }
  0x1e   : > { %886 = vmatprep.mubr.msk.f32.mxu1 %vm1101_vm1, %v1100_v1  ;;  %868 = vmatprep.mubr.msk.f32.mxu0 %vm1101_vm1, %v1100_v1 }
  0x1f   : > { %887 = vmatmul.mubr.msk.f32.vlgmr.msra.gmra.mxu1 %vm280_vm0, %v268_v8 }
  0x20   : > { %889 = vmatprep.mubr.msk.f32.mxu1 %vm1101_vm1, %v1100_v1 }
  0x21   : > { %869 = vmatmul.mubr.msk.f32.gmra.mxu0 %vm280_vm0, %v262_v9 }
  0x22   : > { %871 = vmatprep.mubr.msk.f32.mxu0 %vm1101_vm1, %v1100_v1 }
  0x23   : > { %890 = vmatmul.mubr.msk.f32.gmra.mxu1 %vm280_vm0, %v269_v10  ;;  %v462_v10 = vld [vmem:[%s1258_s24 + $0x60] sm:$0xff] }
  0x24   : > { %892 = vmatprep.mubr.msk.f32.mxu1 %vm1101_vm1, %v1100_v1 }
  0x25   : > { %872 = vmatmul.mubr.msk.f32.gmra.mxu0 %vm280_vm0, %v263_v11 }
  0x26   : > { %874 = vmatprep.mubr.msk.f32.mxu0 %vm1101_vm1, %v1100_v1 }
  0x27   : > { %893 = vmatmul.mubr.msk.f32.gmra.mxu1 %vm280_vm0, %v270_v12 }
  0x28   : > { %895 = vmatprep.mubr.msk.f32.mxu1 %vm1101_vm1, %v1100_v1 }
  0x29   : > { %875 = vmatmul.mubr.msk.f32.gmra.mxu0 %vm280_vm0, %v264_v13  ;;  %v475_v13 = vadd.f32 %v1264_v21, %v455_v4 }
  0x2a   : > { %877 = vmatprep.mubr.msk.f32.mxu0 %vm1101_vm1, %v1100_v1 }
  0x2b   : > { %896 = vmatmul.mubr.msk.f32.gmra.mxu1 %vm280_vm0, %v271_v14 }
  0x2c   : > { %898 = vmatprep.mubr.msk.f32.mxu1 %vm1101_vm1, %v1100_v1 }
  0x2d   : > { %878 = vmatmul.mubr.msk.f32.gmra.mxu0 %vm280_vm0, %v265_v15 }
  0x2e   : > { %880 = vmatprep.mubr.msk.f32.mxu0 %vm1101_vm1, %v1100_v1 }
  0x2f   : > { %899 = vmatmul.mubr.msk.f32.gmra.mxu1 %vm280_vm0, %v272_v16  ;;  %v456_v16 = vld [vmem:[%s1258_s24 + $0x30] sm:$0xff] }
  0x30   : > { %901 = vmatprep.mubr.msk.f32.mxu1 %vm1101_vm1, %v1100_v1 }
  0x31   : > { %881 = vmatmul.mubr.msk.f32.gmra.mxu0 %vm280_vm0, %v266_v17 }
  0x32   : > { %883 = vmatprep.mubr.msk.f32.mxu0 %vm1101_vm1, %v1100_v1  ;;  %v474_v1 = vadd.f32 %v1264_v21, %v454_v56 }
  0x33   : > { %902 = vmatmul.mubr.msk.f32.gmra.mxu1 %vm280_vm0, %v273_v18 }
  0x35   : > { %884 = vmatmul.mubr.msk.f32.gmra.mxu0 %vm280_vm0, %v267_v19  ;;  %v482_v19 = vadd.f32 %v1264_v21, %v462_v10 }
  0xdd   : > { %v386_v26 = vpop.f32.mrf.mxu0 }
  0xde   : > { %v483_v28 = vadd.f32 %v470_v23, %v386_v26 }
  0xdf   : > { %v867_v30 = vpop.f32.mrf.mxu0  ;;  %v421_v31 = vpop.f32.mrf.mxu1 }
  0xe0   : > { %v496_v33 = vmax.f32 %v483_v28, 0.0  ;;  %v490_v34 = vadd.f32 %v477_v25, %v421_v31  ;;  %v476_v25 = vadd.f32 %v1264_v21, %v456_v16 }
  0xe1   : > { %v391_v36 = vpop.f32.mrf.mxu0  ;;  %v888_v37 = vpop.f32.mrf.mxu1 }
  0xe2   : > { %510 = vst.msk [vmem:[%s1276_s15] sm:$0xff] %vm509_vm2, %v496_v33  ;;  %v503_v39 = vmax.f32 %v490_v34, 0.0  ;;  %v484_v40 = vadd.f32 %v471_v29, %v391_v36 }
  0xe3   : > { %v870_v42 = vpop.f32.mrf.mxu0  ;;  %v426_v43 = vpop.f32.mrf.mxu1 }
  0xe4   : > { %517 = vst.msk [vmem:[%s1276_s15 + $0x38] sm:$0xff] %vm509_vm2, %v503_v39  ;;  %v497_v45 = vmax.f32 %v484_v40, 0.0  ;;  %v491_v46 = vadd.f32 %v478_v35, %v426_v43 }
  0xe5   : > { %v396_v48 = vpop.f32.mrf.mxu0  ;;  %v891_v49 = vpop.f32.mrf.mxu1 }
  0xe6   : > { %511 = vst.msk [vmem:[%s1276_s15 + $0x8] sm:$0xff] %vm509_vm2, %v497_v45  ;;  %v504_v51 = vmax.f32 %v491_v46, 0.0  ;;  %v485_v52 = vadd.f32 %v472_v41, %v396_v48 }
  0xe7   : > { %v873_v54 = vpop.f32.mrf.mxu0  ;;  %v431_v55 = vpop.f32.mrf.mxu1 }
  0xe8   : > { %518 = vst.msk [vmem:[%s1276_s15 + $0x40] sm:$0xff] %vm509_vm2, %v504_v51  ;;  %v498_v57 = vmax.f32 %v485_v52, 0.0  ;;  %v492_v58 = vadd.f32 %v479_v47, %v431_v55 }
  0xe9   : > { %v401_v60 = vpop.f32.mrf.mxu0  ;;  %v894_v61 = vpop.f32.mrf.mxu1 }
  0xea   : > { %512 = vst.msk [vmem:[%s1276_s15 + $0x10] sm:$0xff] %vm509_vm2, %v498_v57  ;;  %v505_v63 = vmax.f32 %v492_v58, 0.0  ;;  %v486_v0 = vadd.f32 %v473_v53, %v401_v60 }
  0xeb   : > { %v876_v2 = vpop.f32.mrf.mxu0  ;;  %v436_v3 = vpop.f32.mrf.mxu1 }
  0xec   : > { %519 = vst.msk [vmem:[%s1276_s15 + $0x48] sm:$0xff] %vm509_vm2, %v505_v63  ;;  %v499_v5 = vmax.f32 %v486_v0, 0.0  ;;  %v493_v6 = vadd.f32 %v480_v59, %v436_v3 }
  0xed   : > { %v406_v8 = vpop.f32.mrf.mxu0  ;;  %v897_v9 = vpop.f32.mrf.mxu1 }
  0xee   : > { %513 = vst.msk [vmem:[%s1276_s15 + $0x18] sm:$0xff] %vm509_vm2, %v499_v5  ;;  %v506_v11 = vmax.f32 %v493_v6, 0.0  ;;  %v487_v12 = vadd.f32 %v474_v1, %v406_v8 }
  0xef   : > { %v879_v14 = vpop.f32.mrf.mxu0  ;;  %v441_v15 = vpop.f32.mrf.mxu1 }
  0xf0   : > { %520 = vst.msk [vmem:[%s1276_s15 + $0x50] sm:$0xff] %vm509_vm2, %v506_v11  ;;  %v500_v17 = vmax.f32 %v487_v12, 0.0  ;;  %v494_v18 = vadd.f32 %v481_v7, %v441_v15 }
  0xf1   : > { %v411_v20 = vpop.f32.mrf.mxu0  ;;  %v900_v22 = vpop.f32.mrf.mxu1 }
  0xf2   : > { %514 = vst.msk [vmem:[%s1276_s15 + $0x20] sm:$0xff] %vm509_vm2, %v500_v17  ;;  %v507_v23 = vmax.f32 %v494_v18, 0.0  ;;  %v488_v24 = vadd.f32 %v475_v13, %v411_v20 }
  0xf3   : > { %v882_v26 = vpop.f32.mrf.mxu0  ;;  %v446_v27 = vpop.f32.mrf.mxu1 }
  0xf4   : > { %521 = vst.msk [vmem:[%s1276_s15 + $0x58] sm:$0xff] %vm509_vm2, %v507_v23  ;;  %v501_v28 = vmax.f32 %v488_v24, 0.0  ;;  %v495_v29 = vadd.f32 %v482_v19, %v446_v27 }
  0xf5   : > { %v416_v30 = vpop.f32.mrf.mxu0  ;;  %v903_v31 = vpop.f32.mrf.mxu1 }
  0xf6   : > { %515 = vst.msk [vmem:[%s1276_s15 + $0x28] sm:$0xff] %vm509_vm2, %v501_v28  ;;  %v508_v32 = vmax.f32 %v495_v29, 0.0  ;;  %v489_v33 = vadd.f32 %v476_v25, %v416_v30  ;;  %529 = sbr.rel (!%p1152_p4) target bundleno = 304 (0x130), region = 40 }
  0xf7   : > { %v885_v34 = vpop.f32.mrf.mxu0 }
  0xf8   : > { %522 = vst.msk [vmem:[%s1276_s15 + $0x60] sm:$0xff] %vm509_vm2, %v508_v32  ;;  %v502_v35 = vmax.f32 %v489_v33, 0.0 }
  0xfa   : > { %516 = vst.msk [vmem:[%s1276_s15 + $0x30] sm:$0xff] %vm509_vm2, %v502_v35 }
  0xfb   : > { %s1422_s30 = smov (!%p532_p8, %s531_s30), 13 }
  0xfc   : > { %s821_s9 = sshll.u32 %s1422_s30, 7 }
  0xfd   : > { %p824_p9 = scmp.eq.s32.totalorder %s821_s9, 0 }
  0xfe   : > { %1008 = sdivrem.u32 (!%p824_p9), %s1422_s30, 13 }
  0xff   : > { %540 = sbr.rel (%p824_p9) target bundleno = 304 (0x130), region = 44 }
 0x107   : > { %s1333_s23 = spop.drf %1008 }
 0x108   : > { %p825_p10 = scmp.le.s32.totalorder %s1333_s23, 0 }
 0x109   : > { %s1415_s18 = smov (!%p825_p10), %s1327_s8  ;;  %s1416_s26 = smov (!%p825_p10), %s1276_s15 }
 0x10a   : > { %751 = sbr.rel (%p825_p10) target bundleno = 279 (0x117), region = 123  ;;  %s1342_s10 = smov (!%p825_p10), 0  }
 0x10b   : > { %s1344_s11 = smov (!%p825_p10), 0  }
 0x10f LB: >> { %v629_v21 = vld [vmem:[%s1074_s26] sm:$0xff]  ;;  %v631_v36 = vld [vmem:[%s1074_s26 + $0x8] sm:$0xff]  ;;  %v633_v37 = vld [vmem:[%s1074_s26 + $0x10] sm:$0xff]  ;;  %s655_s12 = sadd.s32 1, %s1078_s10  ;;  %s623_s11 = sadd.s32 1, %s1082_s11   ;;  %s1082_s11 = sphi %s1344_s11, %s623_s11   ;;  %s1078_s10 = sphi %s1342_s10, %s1417_s10   ;;  %s1074_s26 = sphi %s1416_s26, %s660_s26   ;;  %s1070_s18 = sphi %s1415_s18, %s661_s18  }
 0x110   : >> { %630 = vst [vmem:[%s1070_s18] sm:$0xff] %v629_v21  ;;  %632 = vst [vmem:[%s1070_s18 + $0x8] sm:$0xff] %v631_v36  ;;  %v635_v38 = vld [vmem:[%s1074_s26 + $0x18] sm:$0xff]  ;;  %v637_v39 = vld [vmem:[%s1074_s26 + $0x20] sm:$0xff]  ;;  %p656_p11 = scmp.ge.s32.totalorder %s655_s12, %s1333_s23  ;;  %p622_p12 = scmp.ge.s32.totalorder %s623_s11, %s1333_s23 }
 0x111   : >> { %634 = vst [vmem:[%s1070_s18 + $0x10] sm:$0xff] %v633_v37  ;;  %v639_v40 = vld [vmem:[%s1074_s26 + $0x28] sm:$0xff]  ;;  %636 = vst [vmem:[%s1070_s18 + $0x18] sm:$0xff] %v635_v38  ;;  %v641_v41 = vld [vmem:[%s1074_s26 + $0x30] sm:$0xff] }
 0x112   : >> { %638 = vst [vmem:[%s1070_s18 + $0x20] sm:$0xff] %v637_v39  ;;  %640 = vst [vmem:[%s1070_s18 + $0x28] sm:$0xff] %v639_v40  ;;  %v643_v42 = vld [vmem:[%s1074_s26 + $0x38] sm:$0xff]  ;;  %v645_v43 = vld [vmem:[%s1074_s26 + $0x40] sm:$0xff]  ;;  %s1424_s12 = smov (%p656_p11, %s655_s12), 0  ;;  %625 = sbr.rel (!%p622_p12) target bundleno = 271 (0x10f), region = 129 }
 0x113   : >> { %642 = vst [vmem:[%s1070_s18 + $0x30] sm:$0xff] %v641_v41  ;;  %644 = vst [vmem:[%s1070_s18 + $0x38] sm:$0xff] %v643_v42  ;;  %v647_v44 = vld [vmem:[%s1074_s26 + $0x48] sm:$0xff]  ;;  %v649_v45 = vld [vmem:[%s1074_s26 + $0x50] sm:$0xff]  ;;  %s658_s13 = smul.u32 104, %s1424_s12  ;;  %s1417_s10 = smov %s1424_s12 }
 0x114   : >> { %646 = vst [vmem:[%s1070_s18 + $0x40] sm:$0xff] %v645_v43  ;;  %v651_v46 = vld [vmem:[%s1074_s26 + $0x58] sm:$0xff]  ;;  %648 = vst [vmem:[%s1070_s18 + $0x48] sm:$0xff] %v647_v44  ;;  %v653_v47 = vld [vmem:[%s1074_s26 + $0x60] sm:$0xff] }
 0x115   : >> { %650 = vst [vmem:[%s1070_s18 + $0x50] sm:$0xff] %v649_v45  ;;  %652 = vst [vmem:[%s1070_s18 + $0x58] sm:$0xff] %v651_v46  ;;  %s660_s26 = scalar_lea.vmem %s1276_s15, %s658_s13 [#allocation2]  }
 0x116   : >> { %654 = vst [vmem:[%s1070_s18 + $0x60] sm:$0xff] %v653_v47  ;;  %s661_s18 = scalar_lea.vmem %s1327_s8, %s658_s13  }
 0x117 PF: > { %1010 = sdivrem.u32 %s1422_s30, 13 }
 0x118   : > { %s826_s14 = smul.u32 104, %s1333_s23 }
 0x11a   : > { %s666_s17 = scalar_lea.vmem %s1276_s15, %s826_s14 [#allocation2]   ;;  %s668_s20 = scalar_lea.vmem %s1327_s8, %s826_s14  }
 0x120   : > { %s1011_s21 = spop.drf %1010 }
 0x121   : > { %p828_p13 = scmp.le.s32.totalorder %s1011_s21, 0 }
 0x122   : > { %s1084_s24 = smov (!%p828_p13), %s668_s20   ;;  %s1088_s25 = smov (!%p828_p13), %s666_s17  }
 0x123   : > { %765 = sbr.rel (%p828_p13) target bundleno = 304 (0x130), region = 134  ;;  %s1092_s27 = smov (!%p828_p13), 0  }
 0x124   : > { %s1096_s28 = smov (!%p828_p13), 0  }
 0x128 LB: >> { %v678_v48 = vld [vmem:[%s1090_s25] sm:$0xff]  ;;  %s680_s29 = sadd.s32 1, %s1094_s27  ;;  %s672_s28 = sadd.s32 1, %s1098_s28   ;;  %s1098_s28 = sphi %s1096_s28, %s672_s28   ;;  %s1094_s27 = sphi %s1092_s27, %s1093_s27   ;;  %s1090_s25 = sphi %s1088_s25, %s685_s25   ;;  %s1086_s24 = sphi %s1084_s24, %s686_s24  }
 0x129   : >> { %679 = vst [vmem:[%s1086_s24] sm:$0xff] %v678_v48  ;;  %p681_p0 = scmp.ge.s32.totalorder %s680_s29, %s1011_s21  ;;  %p671_p1 = scmp.ge.s32.totalorder %s672_s28, %s1011_s21 }
 0x12b   : >> { %s1426_s29 = smov (%p681_p0, %s680_s29), 0  ;;  %674 = sbr.rel (!%p671_p1) target bundleno = 296 (0x128), region = 140 }
 0x12c   : >> { %s829_s15 = sshll.u32 %s1426_s29, 3  ;;  %s1093_s27 = smov %s1426_s29  }
 0x12d   : >> { %s685_s25 = scalar_lea.vmem %s666_s17, %s829_s15 [#allocation2]   ;;  %s686_s24 = scalar_lea.vmem %s668_s20, %s829_s15  }
 0x130 PF: > { %p11_p2 = scmp.ge.s32.totalorder %s1142_s19, 4   ;;  %s1418_s15 = smov %s1062_s16 }
 0x131   : > { %s1419_s16 = smov %s1150_s22  ;;  %s1420_s17 = smov %s1142_s19 }
 0x132   :  { %13 = sbr.rel (!%p11_p2) target bundleno = 2 (0x2), region = 151 }

</bundles_post_ra>
